<compile_context>
chip_gen: v5e
topology: v5e:2x2
jax: 0.10.0
libtpu: 0.0.40
codegen_flags: <defaults>
</compile_context>

<pallas_src>
import jax
import jax.numpy as jnp
from jax.experimental import pallas as pl
from jax.experimental.pallas import tpu as pltpu


_MAX_TILE_BYTES = 4 * 1024 * 1024      # <=4 MiB/tile -> 4 double-buffered bufs fit every gen's VMEM
_VMEM_LIMIT_BYTES = 32 * 1024 * 1024   # safe on v5e/v6e (128 MiB phys) and v7x (64 MiB phys)


def _identity_kernel(x_ref, o_ref):
    # Elementwise identity == the whole FlowCompressor forward (and reverse).
    o_ref[...] = x_ref[...]


def _sublane_multiple(dtype):
    # Full-vreg row packing: 8 rows for 4-byte, 16 for 2-byte, 32 for 1-byte dtypes.
    return max(8, 32 // jnp.dtype(dtype).itemsize)


def _lane_dense_view(batch, dim):
    """For lane-sparse inputs (dim < 128) try to reinterpret (batch, dim) as an
    equivalent (rows, cols) slab with cols a multiple of 128 (pure reshape, no
    data movement) so stores lower to unmasked full-lane vst."""
    if dim >= 128:
        return None
    n = batch * dim
    for cols in (2048, 1024, 512, 256, 128):
        if n % cols == 0:
            return (n // cols, cols)
    return None


def _choose_blocks(rows, cols, dtype):
    """Pick a large, dtype-aware, lane-dense tile that fits the VMEM budget."""
    itemsize = jnp.dtype(dtype).itemsize
    sub = _sublane_multiple(dtype)

    # Lane (last) axis: a full-width block is always layout-legal; otherwise
    # the largest multiple of 128 that still leaves room for `sub` rows.
    if cols <= 128 or cols * sub * itemsize <= _MAX_TILE_BYTES:
        bn = cols
    else:
        bn = max(128, (_MAX_TILE_BYTES // (sub * itemsize)) // 128 * 128)
        bn = min(bn, (cols // 128) * 128)

    # Sublane (second-to-last) axis: as many rows as fit the budget, in
    # multiples of `sub`; keep >=2 row-blocks for larger batches so the
    # "parallel" grid axis can shard across v7x's two TensorCores.
    rows_fit = max(sub, (_MAX_TILE_BYTES // (bn * itemsize)) // sub * sub)
    if rows <= sub:
        bm = rows                                    # full-rows block (legal)
    else:
        half = max(sub, (pl.cdiv(rows, 2) // sub) * sub)
        bm = min(rows_fit, half)
    return bm, bn


def flow_compressor_forward(x, reverse=False):
    """Pallas implementation of FlowCompressor.forward (identity map).

    x: (batch, dim) array. Returns an array of the same shape/dtype.
    Since the reference module is a stub (x -> x), callers that don't need the
    kernel machinery can simply return `x`; input_output_aliases below lets
    XLA alias / elide the copy whenever the input buffer is donated.
    """
    del reverse  # forward and reverse are both identity in the stub module.
    batch, dim = x.shape
    orig_shape = x.shape

    # Present a lane-dense slab to the kernel when the feature dim is < 128.
    view = _lane_dense_view(batch, dim)
    x2 = x.reshape(view) if view is not None else x
    rows, cols = x2.shape

    bm, bn = _choose_blocks(rows, cols, x2.dtype)
    grid = (pl.cdiv(rows, bm), pl.cdiv(cols, bn))
    itemsize = jnp.dtype(x2.dtype).itemsize

    out = pl.pallas_call(
        _identity_kernel,
        out_shape=jax.ShapeDtypeStruct((rows, cols), x2.dtype),
        grid=grid,
        in_specs=[pl.BlockSpec((bm, bn), lambda i, j: (i, j))],
        out_specs=pl.BlockSpec((bm, bn), lambda i, j: (i, j)),
        input_output_aliases={0: 0},   # pure copy: let XLA alias/elide when donated
        cost_estimate=pl.CostEstimate(
            flops=0,
            transcendentals=0,
            bytes_accessed=2 * rows * cols * itemsize,
        ),
        compiler_params=pltpu.CompilerParams(
            dimension_semantics=("parallel", "parallel"),
            vmem_limit_bytes=_VMEM_LIMIT_BYTES,
        ),
    )(x2)

    return out.reshape(orig_shape) if view is not None else out


class FlowCompressor:
    """JAX/Pallas port of the PyTorch FlowCompressor stub (x -> x)."""

    def __init__(self, dim):
        self.dim = dim  # no learnable parameters in the reference module

    def __call__(self, x, reverse=False):
        # TODO(synk): replace the identity kernel body with real NICE/RealNVP
        # coupling layers when the flow is implemented; tiling/wrapper stays.
        return flow_compressor_forward(x, reverse=reverse)


if __name__ == "__main__":
    key = jax.random.PRNGKey(0)
    batch, dim = 2, 32
    x = jax.random.normal(key, (batch, dim), dtype=jnp.float32)
    x_expected = x + 0.0  # independent copy (kernel requests in/out aliasing)

    model = FlowCompressor(dim)
    y = jax.block_until_ready(model(x))
    assert y.shape == x_expected.shape and y.dtype == x_expected.dtype
    assert bool(jnp.all(y == x_expected))

    # reverse=True path is also identity (fresh input, avoids reusing a
    # potentially aliased buffer).
    x_rev = x_expected * 1.0
    y_rev = jax.block_until_ready(model(x_rev, reverse=True))
    assert bool(jnp.all(y_rev == x_expected))

    print("KERNEL_OK")
</pallas_src>

<mosaic_0001>
module attributes {stable_mosaic.version = 11 : i64} {
  func.func @_identity_kernel(%arg0: i32, %arg1: i32, %arg2: memref<2x32xf32, #tpu.memory_space<vmem>>, %arg3: memref<2x32xf32, #tpu.memory_space<vmem>>) attributes {dimension_semantics = [#tpu.dimension_semantics<parallel>, #tpu.dimension_semantics<parallel>], iteration_bounds = array<i64: 1, 1>, scalar_prefetch = 0 : i64, scratch_operands = 0 : i64, tpu.core_type = #tpu.core_type<tc>, window_params = [{transform_indices = @transform_0, window_bounds = array<i64: 2, 32>}, {transform_indices = @transform_1, window_bounds = array<i64: 2, 32>}]} {
    %c0 = arith.constant 0 : index
    %c0_0 = arith.constant 0 : index
    %0 = vector.load %arg2[%c0, %c0_0] : memref<2x32xf32, #tpu.memory_space<vmem>>, vector<2x32xf32>
    %c0_1 = arith.constant 0 : index
    %c0_2 = arith.constant 0 : index
    %1 = vector.load %arg3[%c0_1, %c0_2] : memref<2x32xf32, #tpu.memory_space<vmem>>, vector<2x32xf32>
    tpu.vector_store %arg3[%c0_1, %c0_2], %0 {strides = array<i32>} : memref<2x32xf32, #tpu.memory_space<vmem>>, vector<2x32xf32>,
    return
  }
  func.func @transform_0(%arg0: i32, %arg1: i32) -> (i32, i32) {
    %c0_i32 = arith.constant 0 : i32
    return %arg0, %arg1 : i32, i32
  }
  func.func @transform_1(%arg0: i32, %arg1: i32) -> (i32, i32) {
    %c0_i32 = arith.constant 0 : i32
    return %arg0, %arg1 : i32, i32
  }
}

</mosaic_0001>

<bundles_post_ra>
// kernel: tpu_custom_call.1
= control target key start
LH: loop header
LB: loop body
LE: loop exit
PB: predicated region body
PF: predicated region fallthrough
CT: control target
= control target key end

     0   :  { %6 = vsyncpa [#allocation3], 0  ;;  %s115_s0 = inlined_call_operand.hbm [shape: f32[2,32], index: 0, kind: input, shape index: {}, may-alias: {0,1}]   ;;  %s116_s1 = inlined_call_operand.hbm [shape: f32[2,32], index: 1, kind: output, shape index: {}, may-alias: {0,1}]  }
   0x1   :  { %7 = vsyncpa [#allocation4], 0  ;;  %s13_s8 = sshll.u32 %s115_s0, 4  ;;  %s97_s9 = smov [#allocation2]   ;;  %s14_s8 = int_to_ptr.hbm [resolvable:$true] %s13_s8 }
   0x2   :  { %s15_s10 = sshll.u32 %s97_s9, 4  ;;  %s16_s10 = int_to_ptr.vmem [resolvable:$true] %s15_s10 }
   0x3   :  { %18 = dma.hbm_to_vmem [thread:$0]  %s14_s8, 32, %s16_s10, [#allocation3]  }
   0x4   :  { %93 = dma.done.wait [#allocation3], 32  }
   0x5   :  { %94 = vsyncadd [#allocation3], 4294967264  ;;  %s98_s11 = smov [#allocation5]   ;;  %s33_s15 = sshll.u32 %s116_s1, 4  ;;  %vm24_vm0 = vcmask 254976   ;;  %s34_s15 = int_to_ptr.hbm [resolvable:$true] %s33_s15 }
   0x6   :  { %s31_s12 = sshll.u32 %s98_s11, 4  ;;  %v23_v0 = vld [vmem:[#allocation2] sm:$0x3]  ;;  %s32_s12 = int_to_ptr.vmem [resolvable:$true] %s31_s12 }
   0x7   :  { %25 = vst.msk [vmem:[#allocation5] sm:$0x3] %vm24_vm0, %v23_v0 }
   0x8   :  { %36 = dma.vmem_to_hbm [thread:$0]  %s32_s12, 32, %s34_s15, [#allocation4]  }
   0x9   :  { %95 = dma.done.wait [#allocation4], 32  }
   0xa   :  { %96 = vsyncadd [#allocation4], 4294967264 }
   0xb   :  { %41 = vsyncpa [#allocation3], 1 }
   0xc   :  { %42 = vsyncpa [#allocation4], 1 }

</bundles_post_ra>
